<compile_context>
chip_gen: v7x
topology: tpu7x:2x2x1
jax: 0.10.0
libtpu: 0.0.40
codegen_flags: <defaults>
</compile_context>

<pallas_src>
import functools

import jax
import jax.numpy as jnp
from jax.experimental import pallas as pl
from jax.experimental.pallas import tpu as pltpu


# ---------------------------------------------------------------------------
# Kernels
# ---------------------------------------------------------------------------

def _linear_single_kernel(x_ref, w_ref, b_ref, o_ref, *, compute_dtype):
    """Single-shot out = x @ W.T + b (whole F resident in VMEM).

    x_ref: (B, F)   activation (native dtype, cast on the VMEM tile if needed)
    w_ref: (C, F)   weight in its compact (num_classes, F) layout
    b_ref: (1, C)   f32 bias
    o_ref: (B, C)   output
    """
    x = x_ref[...].astype(compute_dtype)
    w = w_ref[...].astype(compute_dtype)
    acc = jax.lax.dot_general(
        x, w,
        dimension_numbers=(((1,), (1,)), ((), ())),   # contract last dims
        preferred_element_type=jnp.float32)
    o_ref[...] = (acc + b_ref[...]).astype(o_ref.dtype)


def _linear_ktiled_kernel(x_ref, w_ref, b_ref, o_ref, *, compute_dtype):
    """K-tiled out = x @ W.T + b, accumulating directly into the resident
    f32 (B, C) output block (output index_map returns (0, 0) for every k).

    x_ref: (B, TK), w_ref: (C, TK), b_ref: (1, C), o_ref: (B, C) f32.
    """
    k = pl.program_id(0)

    @pl.when(k == 0)
    def _init():
        o_ref[...] = jnp.zeros_like(o_ref)

    x = x_ref[...].astype(compute_dtype)
    w = w_ref[...].astype(compute_dtype)
    o_ref[...] += jax.lax.dot_general(
        x, w,
        dimension_numbers=(((1,), (1,)), ((), ())),
        preferred_element_type=jnp.float32)

    @pl.when(k == pl.num_programs(0) - 1)
    def _finalize():
        o_ref[...] += b_ref[...]       # bias added exactly once


# ---------------------------------------------------------------------------
# Tiling helpers
# ---------------------------------------------------------------------------

_SINGLE_TILE_BUDGET = 24 * 1024 * 1024   # resident x+w tiles, single-shot path
_PIPELINE_BUDGET    = 24 * 1024 * 1024   # double-buffered x+w K tiles
_VMEM_LIMIT_BYTES   = 48 * 1024 * 1024   # < v7x 64 MiB physical; fine on v5e/v6e


def _round_up(n, m):
    return ((n + m - 1) // m) * m


def _sublane_rows(rows, elem_bytes):
    # Second-to-last dim physically pads to the sublane tile:
    # 8 rows for 4-byte, 16 for 2-byte, 32 for 1-byte dtypes.
    row_tile = {4: 8, 2: 16, 1: 32}.get(elem_bytes, 8)
    return _round_up(max(rows, 1), row_tile)


def _choose_tk(f, rows_x, rows_w, elem_bytes, budget_bytes=_PIPELINE_BUDGET):
    """Largest lane-aligned K tile whose double-buffered, sublane-padded
    footprint fits the budget; prefers a TK that divides F (no pad pass)."""
    rows = _sublane_rows(rows_x, elem_bytes) + _sublane_rows(rows_w, elem_bytes)
    tk = 512
    while (tk * 2 < f and tk * 2 <= 65536
           and 2 * rows * (tk * 2) * elem_bytes <= budget_bytes):
        tk *= 2
    # Prefer a divisor of F so the wrapper never has to pad.
    t = tk
    while t > 512 and f % t != 0:
        t //= 2
    if f % t == 0:
        tk = t
    return tk


# ---------------------------------------------------------------------------
# Wrapper
# ---------------------------------------------------------------------------

@functools.partial(jax.jit, static_argnames=("compute_dtype",))
def classification_head(x, weight, bias, *, compute_dtype=jnp.float32):
    """x: (B, C, H, W) (or already-flat (B, F)); weight: (num_classes, F);
    bias: (num_classes,).  compute_dtype=jnp.bfloat16 enables an in-kernel
    (VMEM-tile) downcast of the matmul operands with f32 accumulation."""
    B = x.shape[0]
    x_flat = x.reshape(B, -1)              # metadata-only, same as torch .reshape
    F = x_flat.shape[1]
    C = weight.shape[0]
    out_dtype = x.dtype
    b2 = bias.reshape(1, C).astype(jnp.float32)

    x_bytes = jnp.dtype(x_flat.dtype).itemsize
    w_bytes = jnp.dtype(weight.dtype).itemsize

    cost = pl.CostEstimate(
        flops=2 * B * F * C,
        transcendentals=0,
        bytes_accessed=(B * F * x_bytes + C * F * w_bytes
                        + B * C * jnp.dtype(out_dtype).itemsize + C * 4))

    # Sublane-padded VMEM footprint of fully-resident x and W.
    resident_bytes = (_sublane_rows(B, x_bytes) * F * x_bytes
                      + _sublane_rows(C, w_bytes) * F * w_bytes)

    if resident_bytes <= _SINGLE_TILE_BUDGET:
        # --- Single-shot path (covers the shipped F=1024, B=2, C=8 config) ---
        # No grid, no scratch, no init/finalize: one dot + bias -> o_ref.
        return pl.pallas_call(
            functools.partial(_linear_single_kernel, compute_dtype=compute_dtype),
            out_shape=jax.ShapeDtypeStruct((B, C), out_dtype),
            in_specs=[
                pl.BlockSpec((B, F), lambda: (0, 0)),
                pl.BlockSpec((C, F), lambda: (0, 0)),
                pl.BlockSpec((1, C), lambda: (0, 0)),
            ],
            out_specs=pl.BlockSpec((B, C), lambda: (0, 0)),
            compiler_params=pltpu.CompilerParams(
                vmem_limit_bytes=_VMEM_LIMIT_BYTES),
            cost_estimate=cost,
        )(x_flat, weight, b2)

    # --- Large-F fallback: K-tiled reduction with resident f32 output block ---
    TK = _choose_tk(F, B, C, x_bytes)
    F_pad = _round_up(F, TK)
    n_k = F_pad // TK
    x_in, w_in = x_flat, weight
    if F_pad != F:
        # Only reached when no power-of-two TK >= 512 divides F.
        x_in = jnp.pad(x_in, ((0, 0), (0, F_pad - F)))
        w_in = jnp.pad(w_in, ((0, 0), (0, F_pad - F)))

    out_f32 = pl.pallas_call(
        functools.partial(_linear_ktiled_kernel, compute_dtype=compute_dtype),
        out_shape=jax.ShapeDtypeStruct((B, C), jnp.float32),
        grid_spec=pltpu.PrefetchScalarGridSpec(
            num_scalar_prefetch=0,
            grid=(n_k,),
            in_specs=[
                pl.BlockSpec((B, TK), lambda k: (0, k)),   # activations, stream F
                pl.BlockSpec((C, TK), lambda k: (0, k)),   # weight, compact layout
                pl.BlockSpec((1, C), lambda k: (0, 0)),    # bias (tiny, resident)
            ],
            out_specs=pl.BlockSpec((B, C), lambda k: (0, 0)),  # resident across K
        ),
        compiler_params=pltpu.CompilerParams(
            dimension_semantics=("arbitrary",),            # K is a reduction axis
            vmem_limit_bytes=_VMEM_LIMIT_BYTES),
        cost_estimate=cost,
    )(x_in, w_in, b2)
    return out_f32.astype(out_dtype)


def init_params(key, input_size, num_classes):
    # Deterministic init mimicking nn.Linear defaults: U(-1/sqrt(F), 1/sqrt(F)).
    kw, kb = jax.random.split(key)
    bound = 1.0 / jnp.sqrt(jnp.float32(input_size))
    weight = jax.random.uniform(kw, (num_classes, input_size),
                                dtype=jnp.float32, minval=-bound, maxval=bound)
    bias = jax.random.uniform(kb, (num_classes,),
                              dtype=jnp.float32, minval=-bound, maxval=bound)
    return weight, bias


if __name__ == "__main__":
    key = jax.random.PRNGKey(0)
    kx, kp = jax.random.split(key)

    # Small NCHW input: batch=2, channels=4, spatial=16x16 -> F = 4*16*16 = 1024
    B, Cin, H, W = 2, 4, 16, 16
    num_classes = 8
    F = Cin * H * W

    x = jax.random.normal(kx, (B, Cin, H, W), dtype=jnp.float32)
    weight, bias = init_params(kp, F, num_classes)

    out = jax.block_until_ready(classification_head(x, weight, bias))
    assert out.shape == (B, num_classes)
    assert out.dtype == x.dtype

    # Full-f32 reference (exact PyTorch-module semantics).
    x_flat = x.reshape(B, -1)
    ref_f32 = x_flat @ weight.T + bias
    assert jnp.allclose(out, ref_f32, atol=2e-2, rtol=2e-2), "mismatch vs f32 reference"

    print("KERNEL_OK")
</pallas_src>

<mosaic_0001>
module attributes {stable_mosaic.version = 11 : i64} {
  func.func @_linear_single_kernel(%arg0: memref<2x1024xf32, #tpu.memory_space<vmem>>, %arg1: memref<8x1024xf32, #tpu.memory_space<vmem>>, %arg2: memref<1x8xf32, #tpu.memory_space<vmem>>, %arg3: memref<2x8xf32, #tpu.memory_space<vmem>>) attributes {dimension_semantics = [], scalar_prefetch = 0 : i64, scratch_operands = 0 : i64, tpu.core_type = #tpu.core_type<tc>} {
    %c0 = arith.constant 0 : index
    %c0_0 = arith.constant 0 : index
    %0 = vector.load %arg0[%c0, %c0_0] : memref<2x1024xf32, #tpu.memory_space<vmem>>, vector<2x1024xf32>
    %c0_1 = arith.constant 0 : index
    %c0_2 = arith.constant 0 : index
    %1 = vector.load %arg1[%c0_1, %c0_2] : memref<8x1024xf32, #tpu.memory_space<vmem>>, vector<8x1024xf32>
    %cst = arith.constant dense<0.000000e+00> : vector<2x8xf32>
    %2 = tpu.matmul %0, %1, %cst {dimension_numbers = #tpu.dot_dimension_numbers<[1], [1], [0], [0], [0, 0, 1, 0], [], []>} : vector<2x1024xf32>, vector<8x1024xf32>, vector<2x8xf32> -> vector<2x8xf32>
    %c0_3 = arith.constant 0 : index
    %c0_4 = arith.constant 0 : index
    %3 = vector.load %arg2[%c0_3, %c0_4] : memref<1x8xf32, #tpu.memory_space<vmem>>, vector<1x8xf32>
    %4 = vector.broadcast %3 : vector<1x8xf32> to vector<2x8xf32>
    %5 = arith.addf %2, %4 : vector<2x8xf32>
    %c0_5 = arith.constant 0 : index
    %c0_6 = arith.constant 0 : index
    %6 = vector.load %arg3[%c0_5, %c0_6] : memref<2x8xf32, #tpu.memory_space<vmem>>, vector<2x8xf32>
    tpu.vector_store %arg3[%c0_5, %c0_6], %5 {strides = array<i32>} : memref<2x8xf32, #tpu.memory_space<vmem>>, vector<2x8xf32>,
    return
  }
}

</mosaic_0001>

<bundles_post_ra>
// kernel: classification_head.1
= control target key start
LH: loop header
LB: loop body
LE: loop exit
PB: predicated region body
PF: predicated region fallthrough
CT: control target
= control target key end

     0   :  { %v38_v3 = vlaneseq  ;;  %v407_v5 = vmov 1983009808   ;;  %s474_s0 = inlined_call_operand.vmem [shape: f32[2,1024], index: 0, kind: input, shape index: {}]   ;;  %s475_s1 = inlined_call_operand.vmem [shape: f32[8,1024], index: 1, kind: input, shape index: {}]   ;;  %s476_s2 = inlined_call_operand.vmem [shape: f32[1,8], index: 2, kind: input, shape index: {}]   ;;  %s477_s3 = inlined_call_operand.hbm [shape: f32[2,8], index: 3, kind: output, shape index: {}]  }
   0x1   :  { %v18_v0 = vld [vmem:[%s475_s1 + $0x8] sm:$0xff]  ;;  %v17_v1 = vld [vmem:[%s475_s1] sm:$0xff]  ;;  %v36_v6 = vunpack.c.l.s4 %v407_v5  ;;  %v20_v7 = vld [vmem:[%s475_s1 + $0x18] sm:$0xff] }
   0x2   :  { %v22_v2 = vld [vmem:[%s475_s1 + $0x28] sm:$0xff]  ;;  %76 = vmatprep.subr.mxu1 %v18_v0  ;;  %v21_v4 = vld [vmem:[%s475_s1 + $0x20] sm:$0xff]  ;;  %v39_v9 = vshrl.u32 %v38_v3, 7  ;;  %v24_v11 = vld [vmem:[%s475_s1 + $0x38] sm:$0xff] }
   0x3   :  { %216 = vmatprep.subr.mxu0 %v22_v2  ;;  %77 = vmatpush1.xpose.msra.mxu1 %v17_v1  ;;  %v15_v8 = vld [vmem:[%s474_s0] sm:$0xff]  ;;  %v16_v10 = vld [vmem:[%s474_s0 + $0x8] sm:$0xff]  ;;  %v37_v13 = vunpack.c.0.s8 %v36_v6 }
   0x4   :  { %217 = vmatpush1.xpose.msra.mxu0 %v21_v4  ;;  %v34_v12 = vcombine.high %v15_v8, %v15_v8  ;;  %146 = vmatprep.subr.mxu1 %v20_v7  ;;  %v51_v14 = vcombine.high %v16_v10, %v16_v10 }
   0x5   :  { %286 = vmatprep.subr.mxu0 %v24_v11 }
   0x6   :  { %8 = vsyncpa [#allocation3], 0  ;;  %v40_v15 = vsub.s32 %v37_v13, %v39_v9  ;;  %v19_v22 = vld [vmem:[%s475_s1 + $0x10] sm:$0xff]  ;;  %v372_v26 = vld [vmem:[%s476_s2] ss:$0 sm:$0xff]  ;;  %s408_s6 = smov [#allocation2]  }
   0x7   :  { %v23_v23 = vld [vmem:[%s475_s1 + $0x30] sm:$0xff]  ;;  %s364_s1 = sshll.u32 %s408_s6, 4  ;;  %vm356_vm0 = vcmask 58368   ;;  %s365_s1 = int_to_ptr.vmem [resolvable:$true] %s364_s1 }
   0x8   :  { %v41_v16 = vrot.slane %v15_v8, %v40_v15  ;;  %v58_v17 = vrot.slane %v16_v10, %v40_v15  ;;  %v48_v18 = vrot.slane %v34_v12, %v40_v15  ;;  %v65_v19 = vrot.slane %v51_v14, %v40_v15  ;;  %s383_s7 = scalar_lea.vmem %s365_s1, 32  ;;  %p388_p1 = scmp.lt.s32.totalorder %s365_s1, %s365_s1 }
   0x9   :  { %p384_p0 = scmp.ne.s32.totalorder %s365_s1, %s383_s7  ;;  %p389_p2 = scmp.lt.s32.totalorder %s383_s7, %s383_s7 }
   0xa   :  { %v49_v20 = vcombine.high %v41_v16, %v41_v16  ;;  %v66_v21 = vcombine.high %v58_v17, %v58_v17  ;;  %v50_v24 = vcombine.high %v48_v18, %v48_v18  ;;  %v67_v25 = vcombine.high %v65_v19, %v65_v19 }
   0xb   :  { %p390_p3 = por %p389_p2, %p388_p1 }
   0xc   :  { %140 = vmatprep.mubr.f32.mxu1 %v49_v20  ;;  %280 = vmatprep.mubr.f32.mxu0 %v66_v21 }
   0xd   :  { %141 = vmatmul.mubr.f32.vlgmr.msra.gmra.mrb[0].mxu1 %v41_v16  ;;  %281 = vmatmul.mubr.f32.vlgmr.msra.gmra.mrb[0].mxu0 %v58_v17  ;;  %p391_p4 = pnand %p390_p3, %p384_p0 }
   0xe   :  { %147 = vmatpush1.xpose.msra.mxu1 %v19_v22  ;;  %287 = vmatpush1.xpose.msra.mxu0 %v23_v23 }
   0xf   :  { %210 = vmatprep.mubr.f32.mxu1 %v50_v24  ;;  %350 = vmatprep.mubr.f32.mxu0 %v67_v25 }
  0x15   :  { %211 = vmatmul.mubr.f32.vlgmr.msra.gmra.mrb[0].mxu1 %v48_v18  ;;  %351 = vmatmul.mubr.f32.vlgmr.msra.gmra.mrb[0].mxu0 %v65_v19 }
  0xe8   :  { %v212_v27 = vpop.f32.mrb[0].mxu1  ;;  %v352_v28 = vpop.f32.mrb[0].mxu0 }
  0xe9   :  { %v373_v29 = vadd.f32 %v372_v26, %v212_v27  ;;  %v214_v30 = vpop.f32.mrb[1].mxu1  ;;  %v354_v31 = vpop.f32.mrb[1].mxu0 }
  0xeb   :  { %v374_v32 = vadd.f32 %v373_v29, %v352_v28 }
  0xed   :  { %357 = vst.msk [vmem:[#allocation2] sm:$0x3] %vm356_vm0, %v374_v32 }
  0xee   :  { %394 = shalt.err (!%p391_p4)
}
  0xef   :  { %s395_s9 = scalar_lea.hbm %s477_s3, 32 }
  0xf0   :  { %p396_p5 = scmp.ne.s32.totalorder %s477_s3, %s395_s9  ;;  %p399_p6 = scmp.lt.u32.totalorder %s395_s9, %s477_s3 }
  0xf2   :  { %p401_p7 = pnand %p399_p6, %p396_p5 }
  0xf4   :  { %404 = shalt.err (!%p401_p7)
}
  0xf5   :  { %367 = dma.vmem_to_hbm [thread:$0]  %s365_s1, 32, %s477_s3, [#allocation3]  }
  0xf6   :  { %405 = dma.done.wait [#allocation3], 32  }
  0xf7   :  { %406 = vsyncadd [#allocation3], 4294967264 }
  0xf8   :  { %371 = vsyncpa [#allocation3], 1 }

</bundles_post_ra>
